<compile_context>
chip_gen: v7x
topology: tpu7x:2x2x1
jax: 0.10.0
libtpu: 0.0.40
codegen_flags: <defaults>
</compile_context>

<pallas_src>
import functools

import jax
import jax.numpy as jnp
from jax import lax
from jax.experimental import pallas as pl
from jax.experimental.pallas import tpu as pltpu

N_EMBD = 64       # n_embd in the PyTorch module
HEAD_SIZE = 16    # head_size argument
BLOCK_SIZE = 79   # causal mask buffer size (T must be <= 79)


def head_kernel(x_ref, wq_ref, wk_ref, wv_ref, o_ref, *, scale, matmul_dtype):
    """One grid step = BB complete batch elements.

    x_ref : (BB, T, C)      VMEM (streamed)
    w*_ref: (C, H)          VMEM (resident: same block every step, no re-DMA)
    o_ref : (1, BB, T*H)    VMEM (lane-dense output slab)
    """
    BB, T, C = x_ref.shape
    H = wq_ref.shape[1]
    exact = jnp.dtype(matmul_dtype) == jnp.dtype(jnp.float32)
    prec = lax.Precision.HIGHEST if exact else lax.Precision.DEFAULT

    # One fat (BB*T, C) activation block shared by the three projections.
    x2 = x_ref[...].reshape(BB * T, C).astype(matmul_dtype)

    def proj(w_ref):
        return jnp.dot(
            x2, w_ref[...].astype(matmul_dtype),
            preferred_element_type=jnp.float32, precision=prec,
        ).reshape(BB, T, H)

    q = proj(wq_ref)
    k = proj(wk_ref)
    v = proj(wv_ref)

    # Attention scores scaled by C**-0.5 (the PyTorch code scales by n_embd,
    # not head_size).  Contract the head dim directly -- no k.T materialization.
    wei = jnp.einsum(
        "btd,bkd->btk", q.astype(matmul_dtype), k.astype(matmul_dtype),
        preferred_element_type=jnp.float32, precision=prec) * scale   # (BB, T, T)

    # Causal (lower-triangular) mask; large finite negative keeps exp() clean.
    row = lax.broadcasted_iota(jnp.int32, (T, T), 0)
    col = lax.broadcasted_iota(jnp.int32, (T, T), 1)
    wei = jnp.where((col <= row)[None, :, :], wei, -1e30)

    # Numerically stable softmax in f32.  Exact division on the f32 path
    # (matches PyTorch); EUP approx reciprocal only on the bf16 fast path.
    wei = wei - jnp.max(wei, axis=-1, keepdims=True)
    p = jnp.exp(wei)
    denom = jnp.sum(p, axis=-1, keepdims=True)
    if exact:
        p = p / denom
    else:
        p = p * pl.reciprocal(denom, approx=True)

    # TODO(synk): dropout p=0.0 is identity; for p > 0 build the keep mask with
    # pltpu.prng_seed / pltpu.prng_random_bits in-kernel.

    o = jnp.einsum(
        "btk,bkd->btd", p.astype(matmul_dtype), v.astype(matmul_dtype),
        preferred_element_type=jnp.float32, precision=prec)           # (BB, T, H)

    # Lane-dense store: repack (BB, T, H) -> (1, BB, T*H) so the writeback is
    # unmasked full-lane vst + a dense DMA (H=16 alone would be 16/128 lanes).
    o_ref[...] = o.reshape(1, BB, T * H).astype(o_ref.dtype)


def _fold_batch(B, T, rows_target, min_grid_steps):
    """Largest BB that divides B (no edge/pad blocks) with ~rows_target rows."""
    limit = max(1, rows_target // max(T, 1))
    if min_grid_steps > 1:
        # v7x (2 TensorCores): keep >= min_grid_steps parallel grid steps.
        limit = min(limit, max(1, B // min_grid_steps))
    limit = min(limit, B)
    for bb in range(limit, 0, -1):
        if B % bb == 0:
            return bb
    return 1


def head_forward(x, wk, wq, wv, *, matmul_dtype=None, rows_target=2048,
                 min_grid_steps=1):
    """x: (B, T, C); wk/wq/wv: (C, H). Returns (B, T, H) in x.dtype.

    matmul_dtype=jnp.bfloat16 feeds bf16 operands to the MXU (all of v5e/v6e/
    v7x take bf16 natively); pass x/weights in bf16 too to halve HBM traffic.
    Default (None) picks bf16 iff x is bf16, else exact f32.
    """
    B, T, C = x.shape
    H = wq.shape[1]
    assert T <= BLOCK_SIZE, "T exceeds the module's causal buffer (block_size=79)"

    if matmul_dtype is None:
        matmul_dtype = jnp.bfloat16 if x.dtype == jnp.bfloat16 else jnp.float32

    # Fold batch elements per grid step (fat projection matmul, ~0.35us/step
    # overhead amortized).  BB divides B exactly -> no padding, no edge blocks,
    # no extra HBM reads/writes.  VMEM per step (x block + scores) stays well
    # under the scoped default on all generations at rows_target=2048.
    BB = _fold_batch(B, T, rows_target, min_grid_steps)
    n_blocks = B // BB

    kernel = functools.partial(
        head_kernel, scale=float(C) ** -0.5, matmul_dtype=matmul_dtype)

    out = pl.pallas_call(
        kernel,
        out_shape=jax.ShapeDtypeStruct((n_blocks, BB, T * H), x.dtype),
        grid_spec=pltpu.PrefetchScalarGridSpec(
            num_scalar_prefetch=0,
            grid=(n_blocks,),
            in_specs=[
                # Streamed activations.  If a profile ever shows exposed DMA,
                # add pipeline_mode=pl.Buffered(3) here (and only here).
                pl.BlockSpec((BB, T, C), lambda g: (g, 0, 0)),
                # Resident projection weights (same block index every step).
                pl.BlockSpec((C, H), lambda g: (0, 0)),
                pl.BlockSpec((C, H), lambda g: (0, 0)),
                pl.BlockSpec((C, H), lambda g: (0, 0)),
            ],
            out_specs=pl.BlockSpec((1, BB, T * H), lambda g: (g, 0, 0)),
        ),
        compiler_params=pltpu.CompilerParams(
            dimension_semantics=("parallel",),
        ),
    )(x, wq, wk, wv)

    # Free row-major reshape back to (B, T, H); no slice copy.
    # TODO(synk): for the full model, fuse all heads into one kernel (resident
    # (C, 3*H*num_heads) weights) to amortize the x read and fatten MXU columns.
    return out.reshape(B, T, H)


def reference_forward(x, wk, wq, wv):
    """Pure-JAX reference replicating the PyTorch forward (full f32 precision)."""
    B, T, C = x.shape
    hp = lax.Precision.HIGHEST
    k = jnp.einsum("btc,ch->bth", x, wk, precision=hp)
    q = jnp.einsum("btc,ch->bth", x, wq, precision=hp)
    v = jnp.einsum("btc,ch->bth", x, wv, precision=hp)
    wei = jnp.einsum("btd,bkd->btk", q, k, precision=hp) * (C ** -0.5)
    tril = jnp.tril(jnp.ones((T, T)))
    wei = jnp.where(tril == 0, -jnp.inf, wei)
    wei = jax.nn.softmax(wei, axis=-1)
    return jnp.einsum("btk,bkd->btd", wei, v, precision=hp)


if __name__ == "__main__":
    key = jax.random.PRNGKey(0)
    kx, kk, kq, kv, kx2, kx3 = jax.random.split(key, 6)

    B, T, C, H = 2, 8, N_EMBD, HEAD_SIZE   # T <= block_size (79)

    x = jax.random.normal(kx, (B, T, C), dtype=jnp.float32)
    bound = 1.0 / (C ** 0.5)
    wk = jax.random.uniform(kk, (C, H), minval=-bound, maxval=bound, dtype=jnp.float32)
    wq = jax.random.uniform(kq, (C, H), minval=-bound, maxval=bound, dtype=jnp.float32)
    wv = jax.random.uniform(kv, (C, H), minval=-bound, maxval=bound, dtype=jnp.float32)

    ref = reference_forward(x, wk, wq, wv)

    # f32 path: exact softmax division + HIGHEST matmul precision.
    out = jax.block_until_ready(head_forward(x, wk, wq, wv))
    assert out.shape == (B, T, H)
    assert jnp.allclose(out, ref, atol=1e-4, rtol=1e-4)

    # bf16 at the HBM boundary (x / weights / output bf16); softmax stays f32.
    out_bf16 = jax.block_until_ready(
        head_forward(x.astype(jnp.bfloat16), wk.astype(jnp.bfloat16),
                     wq.astype(jnp.bfloat16), wv.astype(jnp.bfloat16),
                     matmul_dtype=jnp.bfloat16))
    assert out_bf16.dtype == jnp.bfloat16
    assert jnp.allclose(out_bf16.astype(jnp.float32), ref, atol=1e-1, rtol=1e-1)

    # Ragged T (=13): full-T blocks, zero padding anywhere.
    B2, T2 = 3, 13
    x2 = jax.random.normal(kx2, (B2, T2, C), dtype=jnp.float32)
    out2 = jax.block_until_ready(head_forward(x2, wk, wq, wv))
    ref2 = reference_forward(x2, wk, wq, wv)
    assert out2.shape == (B2, T2, H)
    assert jnp.allclose(out2, ref2, atol=1e-4, rtol=1e-4)

    # Multi-step grid (n_blocks > 1) exercises resident-weight reuse.
    B3, T3 = 4, 8
    x3 = jax.random.normal(kx3, (B3, T3, C), dtype=jnp.float32)
    out3 = jax.block_until_ready(head_forward(x3, wk, wq, wv, rows_target=16))
    ref3 = reference_forward(x3, wk, wq, wv)
    assert out3.shape == (B3, T3, H)
    assert jnp.allclose(out3, ref3, atol=1e-4, rtol=1e-4)

    print("KERNEL_OK")
</pallas_src>

<mosaic_0001>
module attributes {stable_mosaic.version = 11 : i64} {
  func.func @head_kernel(%arg0: i32, %arg1: memref<2x8x64xf32, #tpu.memory_space<vmem>>, %arg2: memref<64x16xf32, #tpu.memory_space<vmem>>, %arg3: memref<64x16xf32, #tpu.memory_space<vmem>>, %arg4: memref<64x16xf32, #tpu.memory_space<vmem>>, %arg5: memref<1x2x128xf32, #tpu.memory_space<vmem>>) attributes {dimension_semantics = [#tpu.dimension_semantics<parallel>], iteration_bounds = array<i64: 1>, scalar_prefetch = 0 : i64, scratch_operands = 0 : i64, tpu.core_type = #tpu.core_type<tc>, window_params = [{transform_indices = @transform_0, window_bounds = array<i64: 2, 8, 64>}, {pipeline_mode = #tpu.pipeline_mode<synchronous>, transform_indices = @transform_1, window_bounds = array<i64: 64, 16>}, {pipeline_mode = #tpu.pipeline_mode<synchronous>, transform_indices = @transform_2, window_bounds = array<i64: 64, 16>}, {pipeline_mode = #tpu.pipeline_mode<synchronous>, transform_indices = @transform_3, window_bounds = array<i64: 64, 16>}, {transform_indices = @transform_4, window_bounds = array<i64: 1, 2, 128>}]} {
    %c0 = arith.constant 0 : index
    %c0_0 = arith.constant 0 : index
    %c0_1 = arith.constant 0 : index
    %0 = vector.load %arg1[%c0, %c0_0, %c0_1] : memref<2x8x64xf32, #tpu.memory_space<vmem>>, vector<2x8x64xf32>
    %1 = vector.shape_cast %0 : vector<2x8x64xf32> to vector<16x64xf32>
    %c0_2 = arith.constant 0 : index
    %c0_3 = arith.constant 0 : index
    %2 = vector.load %arg2[%c0_2, %c0_3] : memref<64x16xf32, #tpu.memory_space<vmem>>, vector<64x16xf32>
    %cst = arith.constant dense<0.000000e+00> : vector<16x16xf32>
    %3 = tpu.matmul %1, %2, %cst {dimension_numbers = #tpu.dot_dimension_numbers<[1], [0], [0], [1], [0, 0, 1, 1], [], []>, precision = #tpu.contract_precision<fp32>} : vector<16x64xf32>, vector<64x16xf32>, vector<16x16xf32> -> vector<16x16xf32>
    %4 = vector.shape_cast %3 : vector<16x16xf32> to vector<2x8x16xf32>
    %c0_4 = arith.constant 0 : index
    %c0_5 = arith.constant 0 : index
    %5 = vector.load %arg3[%c0_4, %c0_5] : memref<64x16xf32, #tpu.memory_space<vmem>>, vector<64x16xf32>
    %cst_6 = arith.constant dense<0.000000e+00> : vector<16x16xf32>
    %6 = tpu.matmul %1, %5, %cst_6 {dimension_numbers = #tpu.dot_dimension_numbers<[1], [0], [0], [1], [0, 0, 1, 1], [], []>, precision = #tpu.contract_precision<fp32>} : vector<16x64xf32>, vector<64x16xf32>, vector<16x16xf32> -> vector<16x16xf32>
    %7 = vector.shape_cast %6 : vector<16x16xf32> to vector<2x8x16xf32>
    %c0_7 = arith.constant 0 : index
    %c0_8 = arith.constant 0 : index
    %8 = vector.load %arg4[%c0_7, %c0_8] : memref<64x16xf32, #tpu.memory_space<vmem>>, vector<64x16xf32>
    %cst_9 = arith.constant dense<0.000000e+00> : vector<16x16xf32>
    %9 = tpu.matmul %1, %8, %cst_9 {dimension_numbers = #tpu.dot_dimension_numbers<[1], [0], [0], [1], [0, 0, 1, 1], [], []>, precision = #tpu.contract_precision<fp32>} : vector<16x64xf32>, vector<64x16xf32>, vector<16x16xf32> -> vector<16x16xf32>
    %10 = vector.shape_cast %9 : vector<16x16xf32> to vector<2x8x16xf32>
    "tpu.trace_start"() <{level = 10 : i32, message = "btd,bkd->btk"}> : () -> ()
    %cst_10 = arith.constant dense<0.000000e+00> : vector<2x8x8xf32>
    %11 = tpu.matmul %4, %7, %cst_10 {dimension_numbers = #tpu.dot_dimension_numbers<[2], [2], [1], [1], [0, 0, 0, 1, 1, 1], [0], [0]>, precision = #tpu.contract_precision<fp32>} : vector<2x8x16xf32>, vector<2x8x16xf32>, vector<2x8x8xf32> -> vector<2x8x8xf32>
    "tpu.trace_stop"() : () -> ()
    %cst_11 = arith.constant 1.250000e-01 : f32
    %12 = vector.broadcast %cst_11 : f32 to vector<2x8x8xf32>
    %13 = arith.mulf %11, %12 : vector<2x8x8xf32>
    %14 = tpu.iota {dimensions = array<i32: 0>} : vector<8x8xi32>
    %15 = tpu.iota {dimensions = array<i32: 1>} : vector<8x8xi32>
    %16 = arith.cmpi sle, %15, %14 : vector<8x8xi32>
    %17 = vector.shape_cast %16 : vector<8x8xi1> to vector<1x8x8xi1>
    %cst_12 = arith.constant -1.000000e+30 : f32
    %18 = vector.shape_cast %17 : vector<1x8x8xi1> to vector<1x8x8xi1>
    %19 = vector.broadcast %18 : vector<1x8x8xi1> to vector<2x8x8xi1>
    %20 = vector.broadcast %cst_12 : f32 to vector<2x8x8xf32>
    %21 = arith.select %19, %13, %20 : vector<2x8x8xi1>, vector<2x8x8xf32>
    %cst_13 = arith.constant dense<0xFF800000> : vector<2x8xf32>
    %22 = vector.multi_reduction <maximumf>, %21, %cst_13 [2] : vector<2x8x8xf32> to vector<2x8xf32>
    %23 = vector.shape_cast %22 : vector<2x8xf32> to vector<2x8x1xf32>
    %24 = vector.broadcast %23 : vector<2x8x1xf32> to vector<2x8x8xf32>
    %25 = arith.subf %21, %24 : vector<2x8x8xf32>
    %26 = math.exp %25 : vector<2x8x8xf32>
    %cst_14 = arith.constant dense<0.000000e+00> : vector<2x8xf32>
    %27 = vector.multi_reduction <add>, %26, %cst_14 [2] : vector<2x8x8xf32> to vector<2x8xf32>
    %28 = vector.shape_cast %27 : vector<2x8xf32> to vector<2x8x1xf32>
    %29 = vector.broadcast %28 : vector<2x8x1xf32> to vector<2x8x8xf32>
    %30 = arith.divf %26, %29 : vector<2x8x8xf32>
    "tpu.trace_start"() <{level = 10 : i32, message = "btk,bkd->btd"}> : () -> ()
    %cst_15 = arith.constant dense<0.000000e+00> : vector<2x8x16xf32>
    %31 = tpu.matmul %30, %10, %cst_15 {dimension_numbers = #tpu.dot_dimension_numbers<[2], [1], [1], [2], [0, 0, 0, 1, 1, 2], [0], [0]>, precision = #tpu.contract_precision<fp32>} : vector<2x8x8xf32>, vector<2x8x16xf32>, vector<2x8x16xf32> -> vector<2x8x16xf32>
    "tpu.trace_stop"() : () -> ()
    %32 = vector.shape_cast %31 : vector<2x8x16xf32> to vector<1x2x128xf32>
    %c0_16 = arith.constant 0 : index
    %c0_17 = arith.constant 0 : index
    %c0_18 = arith.constant 0 : index
    %33 = vector.load %arg5[%c0_16, %c0_17, %c0_18] : memref<1x2x128xf32, #tpu.memory_space<vmem>>, vector<1x2x128xf32>
    tpu.vector_store %arg5[%c0_16, %c0_17, %c0_18], %32 {strides = array<i32>} : memref<1x2x128xf32, #tpu.memory_space<vmem>>, vector<1x2x128xf32>,
    return
  }
  func.func @transform_0(%arg0: i32) -> (i32, i32, i32) {
    %c0_i32 = arith.constant 0 : i32
    %c0_i32_0 = arith.constant 0 : i32
    %c0_i32_1 = arith.constant 0 : i32
    return %arg0, %c0_i32, %c0_i32_0 : i32, i32, i32
  }
  func.func @transform_1(%arg0: i32) -> (i32, i32) {
    %c0_i32 = arith.constant 0 : i32
    %c0_i32_0 = arith.constant 0 : i32
    %c0_i32_1 = arith.constant 0 : i32
    return %c0_i32, %c0_i32_0 : i32, i32
  }
  func.func @transform_2(%arg0: i32) -> (i32, i32) {
    %c0_i32 = arith.constant 0 : i32
    %c0_i32_0 = arith.constant 0 : i32
    %c0_i32_1 = arith.constant 0 : i32
    return %c0_i32, %c0_i32_0 : i32, i32
  }
  func.func @transform_3(%arg0: i32) -> (i32, i32) {
    %c0_i32 = arith.constant 0 : i32
    %c0_i32_0 = arith.constant 0 : i32
    %c0_i32_1 = arith.constant 0 : i32
    return %c0_i32, %c0_i32_0 : i32, i32
  }
  func.func @transform_4(%arg0: i32) -> (i32, i32, i32) {
    %c0_i32 = arith.constant 0 : i32
    %c0_i32_0 = arith.constant 0 : i32
    %c0_i32_1 = arith.constant 0 : i32
    return %arg0, %c0_i32, %c0_i32_0 : i32, i32, i32
  }
}

</mosaic_0001>

<bundles_post_ra>
// kernel: tpu_custom_call.1
= control target key start
LH: loop header
LB: loop body
LE: loop exit
PB: predicated region body
PF: predicated region fallthrough
CT: control target
= control target key end

     0   :  { %vm28_vm0 = vcmask 523264   ;;  %s5529_s0 = inlined_call_operand.vmem [shape: f32[2,8,64], index: 0, kind: input, shape index: {}]   ;;  %s5530_s1 = inlined_call_operand.vmem [shape: f32[64,16], index: 1, kind: input, shape index: {}]   ;;  %s5531_s2 = inlined_call_operand.vmem [shape: f32[64,16], index: 2, kind: input, shape index: {}]   ;;  %s5532_s3 = inlined_call_operand.vmem [shape: f32[64,16], index: 3, kind: input, shape index: {}]   ;;  %s5533_s4 = inlined_call_operand.hbm [shape: f32[1,2,128], index: 4, kind: output, shape index: {}]  }
   0x1   :  { %v20_v0 = vld [vmem:[%s5530_s1] sm:$0xff]  ;;  %v21_v1 = vld [vmem:[%s5530_s1 + $0x8] sm:$0xff]  ;;  %v22_v7 = vld [vmem:[%s5530_s1 + $0x10] sm:$0xff] }
   0x2   :  { %v615_v2 = vld [vmem:[%s5531_s2] sm:$0xff]  ;;  %v36_v3 = vand.u32 4294901760, %v20_v0  ;;  %v39_v4 = vand.u32 4294901760, %v21_v1  ;;  %v616_v5 = vld [vmem:[%s5531_s2 + $0x8] sm:$0xff]  ;;  %v23_v8 = vld [vmem:[%s5530_s1 + $0x18] sm:$0xff]  ;;  %v42_v10 = vand.u32 4294901760, %v22_v7 }
   0x3   :  { %v624_v6 = vand.u32 4294901760, %v615_v2  ;;  %v627_v9 = vand.u32 4294901760, %v616_v5  ;;  %v45_v11 = vand.u32 4294901760, %v23_v8  ;;  %v4899_v12 = vld [vmem:[%s5531_s2 + $0x10] sm:$0xff]  ;;  %v4904_v13 = vld [vmem:[%s5531_s2 + $0x18] sm:$0xff]  ;;  %v4909_v14 = vld [vmem:[%s5530_s1 + $0x20] sm:$0xff] }
   0x4   :  { %v4911_v15 = vpack.c.bf16 %v39_v4, %v36_v3  ;;  %v630_v16 = vand.u32 4294901760, %v4899_v12  ;;  %v633_v17 = vand.u32 4294901760, %v4904_v13  ;;  %v4918_v18 = vld [vmem:[%s5530_s1 + $0x28] sm:$0xff]  ;;  %v48_v19 = vand.u32 4294901760, %v4909_v14  ;;  %v4924_v20 = vld [vmem:[%s5531_s2 + $0x20] sm:$0xff]  ;;  %v4940_v26 = vld [vmem:[%s5530_s1 + $0x30] sm:$0xff] }
   0x5   :  { %v4929_v21 = vld [vmem:[%s5531_s2 + $0x28] sm:$0xff]  ;;  %v4931_v22 = vpack.c.bf16 %v627_v9, %v624_v6  ;;  %v4933_v23 = vpack.c.bf16 %v45_v11, %v42_v10  ;;  %v51_v24 = vand.u32 4294901760, %v4918_v18  ;;  %v636_v25 = vand.u32 4294901760, %v4924_v20  ;;  %v4945_v27 = vld [vmem:[%s5530_s1 + $0x38] sm:$0xff]  ;;  %v4950_v28 = vld [vmem:[%s5531_s2 + $0x30] sm:$0xff] }
   0x6   :  { %4440 = vmatprep.subr.bf16.mxu0 %v4911_v15  ;;  %v4957_v29 = vpack.c.bf16 %v633_v17, %v630_v16  ;;  %v639_v30 = vand.u32 4294901760, %v4929_v21  ;;  %v54_v31 = vand.u32 4294901760, %v4940_v26  ;;  %v57_v32 = vand.u32 4294901760, %v4945_v27  ;;  %v4965_v33 = vld [vmem:[%s5531_s2 + $0x38] sm:$0xff]  ;;  %v18_v34 = vld [vmem:[%s5529_s0] sm:$0xff]  ;;  %v19_v39 = vld [vmem:[%s5529_s0 + $0x8] sm:$0xff] }
   0x7   :  { %4536 = vmatprep.subr.bf16.mxu1 %v4931_v22  ;;  %4442 = vmatpush3.bf16.msra.mxu0 %v4911_v15  ;;  %v4976_v35 = vpack.c.bf16 %v51_v24, %v48_v19  ;;  %v642_v36 = vand.u32 4294901760, %v4950_v28  ;;  %v645_v37 = vand.u32 4294901760, %v4965_v33  ;;  %v30_v38 = vsel %vm28_vm0, %v18_v34, 0 }
   0x8   :  { %9 = vsyncpa [#allocation3], 0  ;;  %4538 = vmatpush3.bf16.msra.mxu1 %v4931_v22  ;;  %4444 = vmatprep.subr.bf16.mxu0 %v4933_v23  ;;  %v4990_v40 = vpack.c.bf16 %v639_v30, %v636_v25  ;;  %v4996_v41 = vpack.c.bf16 %v57_v32, %v54_v31  ;;  %v4998_v42 = vand.u32 4294901760, %v30_v38  ;;  %v5000_v43 = vsub.f32 %v20_v0, %v36_v3  ;;  %s4846_s12 = smov 16   ;;  %s4847_s13 = smov 48  }
   0x9   :  { %4540 = vmatprep.subr.bf16.mxu1 %v4957_v29  ;;  %v5007_v44 = vpack.c.bf16 %v645_v37, %v642_v36  ;;  %v5009_v45 = vsub.f32 %v21_v1, %v39_v4  ;;  %v5011_v46 = vsub.f32 %v615_v2, %v624_v6  ;;  %v5013_v47 = vsub.f32 %v616_v5, %v627_v9  ;;  %s4848_s14 = smov 80   ;;  %s4849_s15 = smov 64  }
   0xa   :  { %v5016_v48 = vsub.f32 %v30_v38, %v4998_v42  ;;  %v131_v49 = vand.u32 4294901760, %v5000_v43  ;;  %v33_v50 = vsel %vm28_vm0, %v19_v39, 0  ;;  %v5020_v51 = vsub.f32 %v22_v7, %v42_v10  ;;  %s4850_s16 = smov 112   ;;  %s4851_s17 = smov 96  }
   0xb   :  { %4446 = vmatpush3.bf16.msra.mxu0 %v4933_v23  ;;  %v138_v52 = vand.u32 4294901760, %v5009_v45  ;;  %v719_v53 = vand.u32 4294901760, %v5011_v46  ;;  %v726_v54 = vand.u32 4294901760, %v5013_v47  ;;  %v5026_v55 = vand.u32 4294901760, %v33_v50  ;;  %s4852_s18 = smov [#allocation2]  }
   0xc   :  { %4542 = vmatpush3.bf16.msra.mxu1 %v4957_v29  ;;  %4448 = vmatprep.subr.bf16.mxu0 %v4976_v35  ;;  %v5031_v56 = vand.u32 4294901760, %v5016_v48  ;;  %v132_v57 = vsub.f32 %v5000_v43, %v131_v49  ;;  %v145_v58 = vand.u32 4294901760, %v5020_v51  ;;  %v5037_v59 = vsub.f32 %v23_v8, %v45_v11  ;;  %s3741_s1 = sshll.u32 %s4852_s18, 4  ;;  %s3742_s1 = int_to_ptr.vmem [resolvable:$true] %s3741_s1 }
   0xd   :  { %4544 = vmatprep.subr.bf16.mxu1 %v4990_v40  ;;  %v139_v60 = vsub.f32 %v5009_v45, %v138_v52  ;;  %v720_v61 = vsub.f32 %v5011_v46, %v719_v53  ;;  %v727_v62 = vsub.f32 %v5013_v47, %v726_v54  ;;  %v5050_v63 = vsub.f32 %v33_v50, %v5026_v55  ;;  %s4817_s19 = scalar_lea.vmem %s3742_s1, 32  ;;  %p4822_p1 = scmp.lt.s32.totalorder %s3742_s1, %s3742_s1 }
   0xe   :  { %v111_v0 = vsub.f32 %v5016_v48, %v5031_v56  ;;  %v133_v1 = vand.u32 4294901760, %v132_v57  ;;  %v146_v2 = vsub.f32 %v5020_v51, %v145_v58  ;;  %v152_v3 = vand.u32 4294901760, %v5037_v59  ;;  %p4818_p0 = scmp.ne.s32.totalorder %s3742_s1, %s4817_s19  ;;  %p4823_p2 = scmp.lt.s32.totalorder %s4817_s19, %s4817_s19 }
   0xf   :  { %4450 = vmatpush3.bf16.msra.mxu0 %v4976_v35  ;;  %v140_v4 = vand.u32 4294901760, %v139_v60  ;;  %v721_v5 = vand.u32 4294901760, %v720_v61  ;;  %v728_v6 = vand.u32 4294901760, %v727_v62  ;;  %v5060_v7 = vand.u32 4294901760, %v5050_v63 }
  0x10   :  { %4546 = vmatpush3.bf16.msra.mxu1 %v4990_v40  ;;  %4452 = vmatprep.subr.bf16.mxu0 %v4996_v41  ;;  %v5064_v8 = vand.u32 4294901760, %v111_v0  ;;  %v147_v9 = vand.u32 4294901760, %v146_v2  ;;  %v153_v10 = vsub.f32 %v5037_v59, %v152_v3  ;;  %v5072_v11 = vsub.f32 %v4899_v12, %v630_v16  ;;  %p4824_p3 = por %p4823_p2, %p4822_p1 }
  0x11   :  { %4548 = vmatprep.subr.bf16.mxu1 %v5007_v44  ;;  %v4455_v34 = vpack.c.bf16 %v140_v4, %v133_v1  ;;  %v4551_v38 = vpack.c.bf16 %v728_v6, %v721_v5  ;;  %v121_v39 = vsub.f32 %v5050_v63, %v5060_v7  ;;  %v5080_v50 = vsub.f32 %v4904_v13, %v633_v17 }
  0x12   :  { %3993 = vmatprep.mubr.f32.mxu0 %v5064_v8  ;;  %4107 = vmatprep.mubr.f32.mxu1 %v5064_v8  ;;  %v154_v57 = vand.u32 4294901760, %v153_v10  ;;  %v733_v12 = vand.u32 4294901760, %v5072_v11  ;;  %v5088_v16 = vsub.f32 %v4909_v14, %v48_v19  ;;  %v5093_v60 = vsub.f32 %v4918_v18, %v51_v24  ;;  %p4825_p4 = pnand %p4824_p3, %p4818_p0 }
  0x13   :  { %4454 = vmatpush3.bf16.msra.mxu0 %v4996_v41  ;;  %v5096_v13 = vand.u32 4294901760, %v121_v39  ;;  %v740_v17 = vand.u32 4294901760, %v5080_v50  ;;  %v5102_v61 = vsub.f32 %v4924_v20, %v636_v25  ;;  %v5107_v14 = vsub.f32 %v4929_v21, %v639_v30 }
  0x14   :  { %4550 = vmatpush3.bf16.msra.mxu1 %v5007_v44  ;;  %4456 = vmatprep.subr.bf16.mxu0 %v4455_v34  ;;  %v4459_v18 = vpack.c.bf16 %v154_v57, %v147_v9  ;;  %v734_v19 = vsub.f32 %v5072_v11, %v733_v12  ;;  %v159_v24 = vand.u32 4294901760, %v5088_v16  ;;  %v166_v62 = vand.u32 4294901760, %v5093_v60 }
  0x15   :  { %4552 = vmatprep.subr.bf16.mxu1 %v4551_v38  ;;  %v741_v20 = vsub.f32 %v5080_v50, %v740_v17  ;;  %v747_v21 = vand.u32 4294901760, %v5102_v61  ;;  %v754_v25 = vand.u32 4294901760, %v5107_v14  ;;  %v5123_v30 = vsub.f32 %v4940_v26, %v54_v31 }
  0x16   :  { %3994 = vmatmul.mubr.f32.vlgmr.msra.gmra.mrb[0].mxu0 %v5096_v13  ;;  %v735_v0 = vand.u32 4294901760, %v734_v19  ;;  %v160_v1 = vsub.f32 %v5088_v16, %v159_v24  ;;  %v167_v2 = vsub.f32 %v5093_v60, %v166_v62  ;;  %v5135_v4 = vsub.f32 %v4945_v27, %v57_v32 }
  0x17   :  { %4458 = vmatpush3.bf16.msra.mxu0 %v4455_v34  ;;  %4108 = vmatmul.mubr.f32.vlgmr.msra.gmra.mrb[0].mxu1 %v5096_v13  ;;  %v742_v26 = vand.u32 4294901760, %v741_v20  ;;  %v748_v31 = vsub.f32 %v5102_v61, %v747_v21  ;;  %v755_v5 = vsub.f32 %v5107_v14, %v754_v25  ;;  %v173_v6 = vand.u32 4294901760, %v5123_v30 }
  0x18   :  { %4554 = vmatpush3.bf16.msra.mxu1 %v4551_v38  ;;  %4460 = vmatprep.subr.bf16.mxu0 %v4459_v18  ;;  %v161_v9 = vand.u32 4294901760, %v160_v1  ;;  %v168_v10 = vand.u32 4294901760, %v167_v2  ;;  %v180_v27 = vand.u32 4294901760, %v5135_v4  ;;  %v5149_v32 = vsub.f32 %v4950_v28, %v642_v36 }
  0x19   :  { %v4555_v34 = vpack.c.bf16 %v742_v26, %v735_v0  ;;  %v749_v39 = vand.u32 4294901760, %v748_v31  ;;  %v756_v57 = vand.u32 4294901760, %v755_v5  ;;  %v174_v19 = vsub.f32 %v5123_v30, %v173_v6  ;;  %4012 = vmatprep.mubr.f32.mxu0 %v4998_v42  ;;  %4126 = vmatprep.mubr.f32.mxu1 %v4998_v42 }
  0x1a   :  { %v4463_v38 = vpack.c.bf16 %v168_v10, %v161_v9  ;;  %v181_v20 = vsub.f32 %v5135_v4, %v180_v27  ;;  %v761_v1 = vand.u32 4294901760, %v5149_v32  ;;  %v5163_v28 = vsub.f32 %v4965_v33, %v645_v37 }
  0x1b   :  { %4556 = vmatprep.subr.bf16.mxu1 %v4555_v34  ;;  %4462 = vmatpush3.bf16.msra.mxu0 %v4459_v18  ;;  %v4559_v36 = vpack.c.bf16 %v756_v57, %v749_v39  ;;  %v175_v0 = vand.u32 4294901760, %v174_v19  ;;  %v4471_v18 = vpack.c.bf16 %v5009_v45, %v5000_v43  ;;  %v4475_v39 = vpack.c.bf16 %v5037_v59, %v5020_v51  ;;  %v1210_v59 = vld [vmem:[%s5532_s3 + $0x38] sm:$0xff] }
  0x1c   :  { %4558 = vmatpush3.bf16.msra.mxu1 %v4555_v34  ;;  %4464 = vmatprep.subr.bf16.mxu0 %v4463_v38  ;;  %v182_v2 = vand.u32 4294901760, %v181_v20  ;;  %v762_v26 = vsub.f32 %v5149_v32, %v761_v1  ;;  %v768_v31 = vand.u32 4294901760, %v5163_v28  ;;  %v4567_v34 = vpack.c.bf16 %v5013_v47, %v5011_v46 }
  0x1d   :  { %4560 = vmatprep.subr.bf16.mxu1 %v4559_v36  ;;  %v4571_v57 = vpack.c.bf16 %v5080_v50, %v5072_v11  ;;  %v4479_v19 = vpack.c.bf16 %v5093_v60, %v5088_v16  ;;  %v4483_v20 = vpack.c.bf16 %v5135_v4, %v5123_v30  ;;  %v4507_v43 = vpack.c.bf16 %v152_v3, %v145_v58  ;;  %v1209_v58 = vld [vmem:[%s5532_s3 + $0x30] sm:$0xff] }
  0x1e   :  { %v4467_v5 = vpack.c.bf16 %v182_v2, %v175_v0  ;;  %v763_v9 = vand.u32 4294901760, %v762_v26  ;;  %v769_v33 = vsub.f32 %v5163_v28, %v768_v31  ;;  %v4503_v0 = vpack.c.bf16 %v138_v52, %v131_v49  ;;  %v1207_v52 = vld [vmem:[%s5532_s3 + $0x20] sm:$0xff] }
  0x1f   :  { %4466 = vmatpush3.bf16.msra.mxu0 %v4463_v38  ;;  %v4575_v38 = vpack.c.bf16 %v5107_v14, %v5102_v61  ;;  %v4599_v2 = vpack.c.bf16 %v726_v54, %v719_v53  ;;  %v4603_v45 = vpack.c.bf16 %v740_v17, %v733_v12  ;;  %v4511_v46 = vpack.c.bf16 %v166_v62, %v159_v24  ;;  %v1208_v53 = vld [vmem:[%s5532_s3 + $0x28] sm:$0xff] }
  0x20   :  { %4562 = vmatpush3.bf16.msra.mxu1 %v4559_v36  ;;  %4468 = vmatprep.subr.bf16.mxu0 %v4467_v5  ;;  %v770_v37 = vand.u32 4294901760, %v769_v33  ;;  %v4579_v36 = vpack.c.bf16 %v5163_v28, %v5149_v32  ;;  %v4607_v47 = vpack.c.bf16 %v754_v25, %v747_v21  ;;  %v4515_v49 = vpack.c.bf16 %v180_v27, %v173_v6 }
  0x21   :  { %v4611_v51 = vpack.c.bf16 %v768_v31, %v761_v1  ;;  %vm4842_vm1 = vmmov 0   ;;  %v1227_v11 = vand.u32 4294901760, %v1208_v53  ;;  %v1230_v17 = vand.u32 4294901760, %v1209_v58 }
  0x22   :  { %v4563_v10 = vpack.c.bf16 %v770_v37, %v763_v9  ;;  %v1233_v61 = vand.u32 4294901760, %v1210_v59  ;;  %vm1791_vm2 = vcmask 130048   ;;  %vm2707_vm4 = vcmask 64512  }
  0x23   :  { %4470 = vmatpush3.bf16.msra.mxu0 %v4467_v5  ;;  %v5324_v27 = vsub.f32 %v1208_v53, %v1227_v11  ;;  %v5336_v31 = vsub.f32 %v1209_v58, %v1230_v17  ;;  %vm3723_vm5 = vcmask 261120   ;;  %vm3725_vm6 = vcmask 392192  }
  0x24   :  { %4564 = vmatprep.subr.bf16.mxu1 %v4563_v10  ;;  %4472 = vmatprep.subr.bf16.mxu0 %v4471_v18  ;;  %v5329_v1 = vpack.c.bf16 %v1233_v61, %v1230_v17  ;;  %v5338_v5 = vsub.f32 %v1210_v59, %v1233_v61  ;;  %vm3728_vm7 = vcmask 654336   ;;  %vm3730_vm8 = vcmask 785408  }
  0x25   :  { %4566 = vmatpush3.bf16.msra.mxu1 %v4563_v10  ;;  %vm3732_vm9 = vcmask 916480  }
  0x26   :  { %4568 = vmatprep.subr.bf16.mxu1 %v4567_v34  ;;  %4013 = vmatmul.mubr.f32.vlgmr.msra.gmra.mrb[0].mxu0 %v5026_v55 }
  0x27   :  { %4474 = vmatpush3.bf16.msra.mxu0 %v4471_v18  ;;  %4031 = vmatprep.mubr.f32.mxu0 %v5016_v48  ;;  %v1342_v18 = vand.u32 4294901760, %v5324_v27 }
  0x28   :  { %4127 = vmatmul.mubr.f32.vlgmr.msra.gmra.mrb[0].mxu1 %v5026_v55  ;;  %4476 = vmatprep.subr.bf16.mxu0 %v4475_v39 }
  0x29   :  { %4570 = vmatpush3.bf16.msra.mxu1 %v4567_v34  ;;  %4145 = vmatprep.mubr.f32.mxu1 %v5016_v48  ;;  %v1349_v34 = vand.u32 4294901760, %v5336_v31 }
  0x2a   :  { %4572 = vmatprep.subr.bf16.mxu1 %v4571_v57 }
  0x2b   :  { %4478 = vmatpush3.bf16.msra.mxu0 %v4475_v39  ;;  %v1356_v39 = vand.u32 4294901760, %v5338_v5 }
  0x2c   :  { %4480 = vmatprep.subr.bf16.mxu0 %v4479_v19 }
  0x2d   :  { %4574 = vmatpush3.bf16.msra.mxu1 %v4571_v57 }
  0x2e   :  { %4576 = vmatprep.subr.bf16.mxu1 %v4575_v38 }
  0x2f   :  { %4482 = vmatpush3.bf16.msra.mxu0 %v4479_v19 }
  0x30   :  { %4484 = vmatprep.subr.bf16.mxu0 %v4483_v20 }
  0x31   :  { %4578 = vmatpush3.bf16.msra.mxu1 %v4575_v38 }
  0x32   :  { %4580 = vmatprep.subr.bf16.mxu1 %v4579_v36 }
  0x33   :  { %4486 = vmatpush3.bf16.msra.mxu0 %v4483_v20  ;;  %v1343_v20 = vsub.f32 %v5324_v27, %v1342_v18 }
  0x34   :  { %4488 = vmatprep.subr.bf16.mxu0 %v4911_v15 }
  0x35   :  { %4582 = vmatpush3.bf16.msra.mxu1 %v4579_v36  ;;  %v1350_v36 = vsub.f32 %v5336_v31, %v1349_v34 }
  0x36   :  { %4584 = vmatprep.subr.bf16.mxu1 %v4931_v22  ;;  %4032 = vmatmul.mubr.f32.vlgmr.msra.gmra.mrb[0].mxu0 %v5050_v63 }
  0x37   :  { %4490 = vmatpush3.bf16.msra.mxu0 %v4911_v15  ;;  %4050 = vmatprep.mubr.f32.mxu0 %v5031_v56 }
  0x38   :  { %4146 = vmatmul.mubr.f32.vlgmr.msra.gmra.mrb[0].mxu1 %v5050_v63  ;;  %4492 = vmatprep.subr.bf16.mxu0 %v4933_v23 }
  0x39   :  { %4586 = vmatpush3.bf16.msra.mxu1 %v4931_v22  ;;  %4164 = vmatprep.mubr.f32.mxu1 %v5031_v56 }
  0x3a   :  { %4588 = vmatprep.subr.bf16.mxu1 %v4957_v29 }
  0x3b   :  { %4494 = vmatpush3.bf16.msra.mxu0 %v4933_v23 }
  0x3c   :  { %4496 = vmatprep.subr.bf16.mxu0 %v4976_v35 }
  0x3d   :  { %4590 = vmatpush3.bf16.msra.mxu1 %v4957_v29 }
  0x3e   :  { %4592 = vmatprep.subr.bf16.mxu1 %v4990_v40 }
  0x3f   :  { %4498 = vmatpush3.bf16.msra.mxu0 %v4976_v35 }
  0x40   :  { %4500 = vmatprep.subr.bf16.mxu0 %v4996_v41 }
  0x41   :  { %4594 = vmatpush3.bf16.msra.mxu1 %v4990_v40 }
  0x42   :  { %4596 = vmatprep.subr.bf16.mxu1 %v5007_v44 }
  0x43   :  { %4502 = vmatpush3.bf16.msra.mxu0 %v4996_v41 }
  0x44   :  { %4504 = vmatprep.subr.bf16.mxu0 %v4503_v0 }
  0x45   :  { %4598 = vmatpush3.bf16.msra.mxu1 %v5007_v44 }
  0x46   :  { %4600 = vmatprep.subr.bf16.mxu1 %v4599_v2  ;;  %4051 = vmatmul.mubr.f32.vlgmr.msra.gmra.mrb[0].mxu0 %v5060_v7 }
  0x47   :  { %4506 = vmatpush3.bf16.msra.mxu0 %v4503_v0  ;;  %4069 = vmatprep.mubr.f32.mxu0 %v4998_v42 }
  0x48   :  { %4165 = vmatmul.mubr.f32.vlgmr.msra.gmra.mrb[0].mxu1 %v5060_v7  ;;  %4508 = vmatprep.subr.bf16.mxu0 %v4507_v43 }
  0x49   :  { %4602 = vmatpush3.bf16.msra.mxu1 %v4599_v2  ;;  %4183 = vmatprep.mubr.f32.mxu1 %v4998_v42 }
  0x4a   :  { %4604 = vmatprep.subr.bf16.mxu1 %v4603_v45 }
  0x4b   :  { %4510 = vmatpush3.bf16.msra.mxu0 %v4507_v43  ;;  %v1344_v43 = vand.u32 4294901760, %v1343_v20 }
  0x4c   :  { %4512 = vmatprep.subr.bf16.mxu0 %v4511_v46 }
  0x4d   :  { %4606 = vmatpush3.bf16.msra.mxu1 %v4603_v45  ;;  %v1357_v45 = vsub.f32 %v5338_v5, %v1356_v39 }
  0x4e   :  { %4608 = vmatprep.subr.bf16.mxu1 %v4607_v47 }
  0x4f   :  { %4514 = vmatpush3.bf16.msra.mxu0 %v4511_v46 }
  0x50   :  { %4516 = vmatprep.subr.bf16.mxu0 %v4515_v49 }
  0x51   :  { %4610 = vmatpush3.bf16.msra.mxu1 %v4607_v47  ;;  %v1351_v47 = vand.u32 4294901760, %v1350_v36 }
  0x52   :  { %4612 = vmatprep.subr.bf16.mxu1 %v4611_v51 }
  0x53   :  { %4518 = vmatpush3.bf16.msra.mxu0 %v4515_v49  ;;  %v1358_v49 = vand.u32 4294901760, %v1357_v45 }
  0x54   :  { %4520 = vmatprep.subr.bf16.mxu0 %v4911_v15 }
  0x55   :  { %4614 = vmatpush3.bf16.msra.mxu1 %v4611_v51  ;;  %v4659_v51 = vpack.c.bf16 %v1358_v49, %v1351_v47 }
  0x56   :  { %4616 = vmatprep.subr.bf16.mxu1 %v4931_v22  ;;  %4070 = vmatmul.mubr.f32.vlgmr.msra.gmra.mrb[0].mxu0 %v5026_v55 }
  0x57   :  { %4522 = vmatpush3.bf16.msra.mxu0 %v4911_v15  ;;  %4088 = vmatprep.mubr.f32.mxu0 %v4998_v42  ;;  %v4841_v15 = vmov 0.0  }
  0x58   :  { %4184 = vmatmul.mubr.f32.vlgmr.msra.gmra.mrb[0].mxu1 %v5026_v55  ;;  %4524 = vmatprep.subr.bf16.mxu0 %v4933_v23 }
  0x59   :  { %4618 = vmatpush3.bf16.msra.mxu1 %v4931_v22  ;;  %4202 = vmatprep.mubr.f32.mxu1 %v4998_v42  ;;  %v1203_v22 = vld [vmem:[%s5532_s3] sm:$0xff] }
  0x5a   :  { %4620 = vmatprep.subr.bf16.mxu1 %v4957_v29 }
  0x5b   :  { %4526 = vmatpush3.bf16.msra.mxu0 %v4933_v23  ;;  %v1204_v23 = vld [vmem:[%s5532_s3 + $0x8] sm:$0xff] }
  0x5c   :  { %4528 = vmatprep.subr.bf16.mxu0 %v4976_v35 }
  0x5d   :  { %4622 = vmatpush3.bf16.msra.mxu1 %v4957_v29  ;;  %v1205_v29 = vld [vmem:[%s5532_s3 + $0x10] sm:$0xff] }
  0x5e   :  { %4624 = vmatprep.subr.bf16.mxu1 %v4990_v40 }
  0x5f   :  { %4530 = vmatpush3.bf16.msra.mxu0 %v4976_v35  ;;  %v1212_v35 = vand.u32 4294901760, %v1203_v22 }
  0x60   :  { %4532 = vmatprep.subr.bf16.mxu0 %v4996_v41 }
  0x61   :  { %4626 = vmatpush3.bf16.msra.mxu1 %v4990_v40  ;;  %v1215_v40 = vand.u32 4294901760, %v1204_v23  ;;  %v5300_v50 = vsub.f32 %v1203_v22, %v1212_v35 }
  0x62   :  { %4628 = vmatprep.subr.bf16.mxu1 %v5007_v44 }
  0x63   :  { %4534 = vmatpush3.bf16.msra.mxu0 %v4996_v41  ;;  %v1206_v41 = vld [vmem:[%s5532_s3 + $0x18] sm:$0xff]  ;;  %v5298_v3 = vpack.c.bf16 %v1215_v40, %v1212_v35  ;;  %v5304_v16 = vsub.f32 %v1204_v23, %v1215_v40  ;;  %v1307_v14 = vand.u32 4294901760, %v5300_v50  ;;  %s4845_s3 = smov 32  }
  0x64   :  { %v1221_v54 = vand.u32 4294901760, %v1206_v41 }
  0x65   :  { %4630 = vmatpush3.bf16.msra.mxu1 %v5007_v44  ;;  %v1218_v44 = vand.u32 4294901760, %v1205_v29  ;;  %4632 = vmatprep.subr.bf16.mxu0 %v5298_v3  ;;  %v1314_v62 = vand.u32 4294901760, %v5304_v16  ;;  %v1308_v4 = vsub.f32 %v5300_v50, %v1307_v14  ;;  %v4663_v23 = vpack.c.bf16 %v5304_v16, %v5300_v50 }
  0x66   :  { %4089 = vmatmul.mubr.f32.vlgmr.msra.gmra.mrb[0].mxu0 %v5026_v55  ;;  %4319 = vmatprep.subr.mxu1 %v4841_v15  ;;  %v5310_v24 = vsub.f32 %v1206_v41, %v1221_v54 }
  0x67   :  { %4221 = vmatprep.mubr.f32.mxu0 %v5064_v8  ;;  %v1224_v8 = vand.u32 4294901760, %v1207_v52  ;;  %v5302_v12 = vpack.c.bf16 %v1221_v54, %v1218_v44  ;;  %v5306_v60 = vsub.f32 %v1205_v29, %v1218_v44  ;;  %4634 = vmatpush3.bf16.msra.mxu0 %v5298_v3  ;;  %v1315_v32 = vsub.f32 %v5304_v16, %v1314_v62 }
  0x68   :  { %4203 = vmatmul.mubr.f32.vlgmr.msra.gmra.mrb[0].mxu1 %v5026_v55  ;;  %v1328_v6 = vand.u32 4294901760, %v5310_v24  ;;  %v1309_v9 = vand.u32 4294901760, %v1308_v4 }
  0x69   :  { %4321 = vmatprep.mubr.msk.f32.mxu1 %vm4842_vm1, %v4841_v15  ;;  %v1321_v21 = vand.u32 4294901760, %v5306_v60  ;;  %v5315_v25 = vsub.f32 %v1207_v52, %v1224_v8  ;;  %4636 = vmatprep.subr.bf16.mxu0 %v5302_v12  ;;  %v5318_v30 = vpack.c.bf16 %v1227_v11, %v1224_v8  ;;  %v1316_v33 = vand.u32 4294901760, %v1315_v32 }
  0x6a   :  { %v1329_v37 = vsub.f32 %v5310_v24, %v1328_v6  ;;  %v4667_v52 = vpack.c.bf16 %v5310_v24, %v5306_v60  ;;  %v4675_v32 = vpack.c.bf16 %v5338_v5, %v5336_v31  ;;  %v2698_v31 = vlaneseq }
  0x6b   :  { %4638 = vmatpush3.bf16.msra.mxu0 %v5302_v12  ;;  %v1322_v28 = vsub.f32 %v5306_v60, %v1321_v21  ;;  %v1335_v26 = vand.u32 4294901760, %v5315_v25  ;;  %v4647_v57 = vpack.c.bf16 %v1316_v33, %v1309_v9  ;;  %v4671_v8 = vpack.c.bf16 %v5324_v27, %v5315_v25 }
  0x6c   :  { %4640 = vmatprep.subr.bf16.mxu0 %v5318_v30  ;;  %v1330_v38 = vand.u32 4294901760, %v1329_v37  ;;  %v4699_v9 = vpack.c.bf16 %v1328_v6, %v1321_v21  ;;  %v5465_v5 = vshrl.u32 %v2698_v31, 7 }
  0x6d   :  { %v1336_v10 = vsub.f32 %v5315_v25, %v1335_v26  ;;  %v1323_v19 = vand.u32 4294901760, %v1322_v28  ;;  %v4703_v60 = vpack.c.bf16 %v1342_v18, %v1335_v26  ;;  %v4707_v26 = vpack.c.bf16 %v1356_v39, %v1349_v34 }
  0x6f   :  { %4642 = vmatpush3.bf16.msra.mxu0 %v5318_v30  ;;  %v4651_v0 = vpack.c.bf16 %v1330_v38, %v1323_v19  ;;  %v1337_v2 = vand.u32 4294901760, %v1336_v10 }
  0x70   :  { %4644 = vmatprep.subr.bf16.mxu0 %v5329_v1 }
  0x71   :  { %v4655_v46 = vpack.c.bf16 %v1344_v43, %v1337_v2 }
  0x73   :  { %4646 = vmatpush3.bf16.msra.mxu0 %v5329_v1 }
  0x74   :  { %4648 = vmatprep.subr.bf16.mxu0 %v4647_v57 }
  0x76   :  { %4222 = vmatmul.mubr.f32.vlgmr.msra.gmra.mrb[2].mxu0 %v5096_v13 }
  0x77   :  { %4650 = vmatpush3.bf16.msra.mxu0 %v4647_v57  ;;  %4240 = vmatprep.mubr.f32.mxu0 %v4998_v42 }
  0x78   :  { %4652 = vmatprep.subr.bf16.mxu0 %v4651_v0 }
  0x7b   :  { %4654 = vmatpush3.bf16.msra.mxu0 %v4651_v0 }
  0x7c   :  { %4656 = vmatprep.subr.bf16.mxu0 %v4655_v46 }
  0x7f   :  { %4658 = vmatpush3.bf16.msra.mxu0 %v4655_v46 }
  0x80   :  { %4660 = vmatprep.subr.bf16.mxu0 %v4659_v51 }
  0x83   :  { %4662 = vmatpush3.bf16.msra.mxu0 %v4659_v51 }
  0x84   :  { %4664 = vmatprep.subr.bf16.mxu0 %v4663_v23 }
  0x86   :  { %4241 = vmatmul.mubr.f32.vlgmr.msra.gmra.mrb[2].mxu0 %v5026_v55 }
  0x87   :  { %4666 = vmatpush3.bf16.msra.mxu0 %v4663_v23  ;;  %4259 = vmatprep.mubr.f32.mxu0 %v5016_v48  ;;  %v4695_v48 = vpack.c.bf16 %v1314_v62, %v1307_v14 }
  0x88   :  { %4668 = vmatprep.subr.bf16.mxu0 %v4667_v52 }
  0x8b   :  { %4670 = vmatpush3.bf16.msra.mxu0 %v4667_v52 }
  0x8c   :  { %4672 = vmatprep.subr.bf16.mxu0 %v4671_v8 }
  0x8f   :  { %4674 = vmatpush3.bf16.msra.mxu0 %v4671_v8 }
  0x90   :  { %4676 = vmatprep.subr.bf16.mxu0 %v4675_v32 }
  0x93   :  { %4678 = vmatpush3.bf16.msra.mxu0 %v4675_v32 }
  0x94   :  { %4680 = vmatprep.subr.bf16.mxu0 %v5298_v3 }
  0x96   :  { %4260 = vmatmul.mubr.f32.vlgmr.msra.gmra.mrb[2].mxu0 %v5050_v63 }
  0x97   :  { %4682 = vmatpush3.bf16.msra.mxu0 %v5298_v3  ;;  %4278 = vmatprep.mubr.f32.mxu0 %v5031_v56 }
  0x98   :  { %4684 = vmatprep.subr.bf16.mxu0 %v5302_v12 }
  0x9b   :  { %4686 = vmatpush3.bf16.msra.mxu0 %v5302_v12 }
  0x9c   :  { %4688 = vmatprep.subr.bf16.mxu0 %v5318_v30 }
  0x9f   :  { %4690 = vmatpush3.bf16.msra.mxu0 %v5318_v30 }
  0xa0   :  { %4692 = vmatprep.subr.bf16.mxu0 %v5329_v1 }
  0xa3   :  { %4694 = vmatpush3.bf16.msra.mxu0 %v5329_v1 }
  0xa4   :  { %4696 = vmatprep.subr.bf16.mxu0 %v4695_v48 }
  0xa6   :  { %4279 = vmatmul.mubr.f32.vlgmr.msra.gmra.mrb[2].mxu0 %v5060_v7 }
  0xa7   :  { %4698 = vmatpush3.bf16.msra.mxu0 %v4695_v48  ;;  %4297 = vmatprep.mubr.f32.mxu0 %v4998_v42 }
  0xa8   :  { %4700 = vmatprep.subr.bf16.mxu0 %v4699_v9 }
  0xab   :  { %4702 = vmatpush3.bf16.msra.mxu0 %v4699_v9 }
  0xac   :  { %4704 = vmatprep.subr.bf16.mxu0 %v4703_v60 }
  0xaf   :  { %4706 = vmatpush3.bf16.msra.mxu0 %v4703_v60 }
  0xb0   :  { %4708 = vmatprep.subr.bf16.mxu0 %v4707_v26 }
  0xb3   :  { %4710 = vmatpush3.bf16.msra.mxu0 %v4707_v26 }
  0xb4   :  { %4712 = vmatprep.subr.bf16.mxu0 %v5298_v3 }
  0xb6   :  { %4298 = vmatmul.mubr.f32.vlgmr.msra.gmra.mrb[2].mxu0 %v5026_v55 }
  0xb7   :  { %4714 = vmatpush3.bf16.msra.mxu0 %v5298_v3  ;;  %4316 = vmatprep.mubr.f32.mxu0 %v4998_v42  ;;  %v2701_v3 = vand.u32 127, %v2698_v31 }
  0xb8   :  { %4716 = vmatprep.subr.bf16.mxu0 %v5302_v12 }
  0xb9   :  { %vm2702_vm3 = vcmp.le.s32.totalorder %v2701_v3, %v5465_v5 }
  0xbb   :  { %4718 = vmatpush3.bf16.msra.mxu0 %v5302_v12 }
  0xbc   :  { %4720 = vmatprep.subr.bf16.mxu0 %v5318_v30 }
  0xbf   :  { %4722 = vmatpush3.bf16.msra.mxu0 %v5318_v30 }
  0xc0   :  { %4724 = vmatprep.subr.bf16.mxu0 %v5329_v1 }
  0xc3   :  { %4726 = vmatpush3.bf16.msra.mxu0 %v5329_v1 }
  0xc6   :  { %4317 = vmatmul.mubr.f32.vlgmr.msra.gmra.mrb[2].mxu0 %v5026_v55 }
 0x139   :  { %v4090_v22 = vpop.f32.mrb[0].mxu0 }
 0x13a   :  { %v605_v29 = vpop.f32.mrb[1].mxu0  ;;  %v2245_v56 = vsel %vm1791_vm2, %v4090_v22, 0 }
 0x13b   :  { %v4204_v35 = vpop.f32.mrb[0].mxu1  ;;  %v1793_v13 = vsel %vm1791_vm2, %v605_v29, 0  ;;  %v2316_v50 = vand.u32 4294901760, %v2245_v56 }
 0x13c   :  { %v5367_v40 = vand.u32 4294901760, %v1793_v13  ;;  %v1193_v41 = vpop.f32.mrb[1].mxu1  ;;  %v2248_v63 = vsel %vm1791_vm2, %v4204_v35, 0 }
 0x13d   :  { %v1796_v44 = vsel %vm1791_vm2, %v1193_v41, 0  ;;  %v2251_v16 = vand.u32 4294901760, %v2248_v63  ;;  %v2317_v14 = vsub.f32 %v2245_v56, %v2316_v50 }
 0x13e   :  { %v1865_v53 = vsub.f32 %v1793_v13, %v5367_v40  ;;  %v5373_v54 = vand.u32 4294901760, %v1796_v44 }
 0x13f   :  { %v2328_v24 = vsub.f32 %v2248_v63, %v2251_v16  ;;  %v2318_v7 = vand.u32 4294901760, %v2317_v14 }
 0x140   :  { %v1866_v58 = vand.u32 4294901760, %v1865_v53  ;;  %v1876_v59 = vsub.f32 %v1796_v44, %v5373_v54  ;;  %4320 = vmatpush3.xpose.msra.mxu1 %v5373_v54 }
 0x141   :  { %4324 = vmatprep.subr.mxu1 %v4841_v15  ;;  %v2329_v62 = vand.u32 4294901760, %v2328_v24  ;;  %v2319_v21 = vsub.f32 %v2317_v14, %v2318_v7 }
 0x142   :  { %v1867_v11 = vsub.f32 %v1865_v53, %v1866_v58  ;;  %v1877_v17 = vand.u32 4294901760, %v1876_v59 }
 0x143   :  { %v2330_v25 = vsub.f32 %v2328_v24, %v2329_v62  ;;  %v2320_v6 = vand.u32 4294901760, %v2319_v21 }
 0x144   :  { %v1868_v61 = vand.u32 4294901760, %v1867_v11  ;;  %v1878_v4 = vsub.f32 %v1876_v59, %v1877_v17 }
 0x145   :  { %v2331_v27 = vand.u32 4294901760, %v2330_v25 }
 0x146   :  { %v1879_v28 = vand.u32 4294901760, %v1878_v4  ;;  %4322 = vmatmul.mubr.f32.vlgmr.msra.gmra.mrb[2].mxu1 %v1868_v61 }
 0x147   :  { %4326 = vmatprep.mubr.msk.f32.mxu1 %vm4842_vm1, %v4841_v15 }
 0x148   :  { %4325 = vmatpush3.xpose.msra.mxu1 %v1879_v28 }
 0x149   :  { %4329 = vmatprep.subr.mxu1 %v4841_v15 }
 0x14e   :  { %4327 = vmatmul.mubr.f32.vlgmr.msra.gmra.mrb[2].mxu1 %v5367_v40 }
 0x14f   :  { %4330 = vmatpush3.xpose.msra.mxu1 %v1876_v59  ;;  %4331 = vmatprep.mubr.msk.f32.mxu1 %vm4842_vm1, %v4841_v15 }
 0x150   :  { %4334 = vmatprep.subr.mxu1 %v4841_v15 }
 0x156   :  { %4332 = vmatmul.mubr.f32.vlgmr.msra.gmra.mrb[2].mxu1 %v1865_v53 }
 0x157   :  { %4335 = vmatpush3.xpose.msra.mxu1 %v5373_v54  ;;  %4336 = vmatprep.mubr.msk.f32.mxu1 %vm4842_vm1, %v4841_v15 }
 0x158   :  { %4339 = vmatprep.subr.mxu1 %v4841_v15 }
 0x15e   :  { %4337 = vmatmul.mubr.f32.vlgmr.msra.gmra.mrb[2].mxu1 %v1866_v58 }
 0x15f   :  { %4340 = vmatpush3.xpose.msra.mxu1 %v1877_v17  ;;  %4341 = vmatprep.mubr.msk.f32.mxu1 %vm4842_vm1, %v4841_v15 }
 0x160   :  { %4344 = vmatprep.subr.mxu1 %v4841_v15 }
 0x166   :  { %4342 = vmatmul.mubr.f32.vlgmr.msra.gmra.mrb[2].mxu1 %v5367_v40 }
 0x167   :  { %4345 = vmatpush3.xpose.msra.mxu1 %v5373_v54  ;;  %4346 = vmatprep.mubr.msk.f32.mxu1 %vm4842_vm1, %v4841_v15 }
 0x168   :  { %4349 = vmatprep.subr.mxu1 %v4841_v15 }
 0x16e   :  { %4347 = vmatmul.mubr.f32.vlgmr.msra.gmra.mrb[2].mxu1 %v5367_v40 }
 0x16f   :  { %4350 = vmatpush3.xpose.msra.mxu1 %v2251_v16  ;;  %4351 = vmatprep.mubr.msk.f32.mxu1 %vm4842_vm1, %v4841_v15 }
 0x170   :  { %4354 = vmatprep.subr.mxu1 %v4841_v15 }
 0x172   :  { %4352 = vmatmul.mubr.f32.vlgmr.msra.gmra.mrb[4].mxu1 %v2320_v6 }
 0x173   :  { %4355 = vmatpush3.xpose.msra.mxu1 %v2331_v27  ;;  %4356 = vmatprep.mubr.msk.f32.mxu1 %vm4842_vm1, %v4841_v15 }
 0x174   :  { %4359 = vmatprep.subr.mxu1 %v4841_v15 }
 0x17a   :  { %4357 = vmatmul.mubr.f32.vlgmr.msra.gmra.mrb[4].mxu1 %v2316_v50 }
 0x17b   :  { %4360 = vmatpush3.xpose.msra.mxu1 %v2328_v24  ;;  %4361 = vmatprep.mubr.msk.f32.mxu1 %vm4842_vm1, %v4841_v15  ;;  %v4843_v24 = vmov 1983009808  }
 0x17c   :  { %4364 = vmatprep.subr.mxu1 %v4841_v15 }
 0x182   :  { %4362 = vmatmul.mubr.f32.vlgmr.msra.gmra.mrb[4].mxu1 %v2317_v14 }
 0x183   :  { %4365 = vmatpush3.xpose.msra.mxu1 %v2251_v16  ;;  %4366 = vmatprep.mubr.msk.f32.mxu1 %vm4842_vm1, %v4841_v15 }
 0x184   :  { %4369 = vmatprep.subr.mxu1 %v4841_v15 }
 0x18a   :  { %4367 = vmatmul.mubr.f32.vlgmr.msra.gmra.mrb[4].mxu1 %v2318_v7  ;;  %v3630_v7 = vunpack.c.l.s4 %v4843_v24 }
 0x18b   :  { %4370 = vmatpush3.xpose.msra.mxu1 %v2329_v62  ;;  %4371 = vmatprep.mubr.msk.f32.mxu1 %vm4842_vm1, %v4841_v15  ;;  %v4844_v62 = vmov 1934713408  }
 0x18c   :  { %4374 = vmatprep.subr.mxu1 %v4841_v15  ;;  %v3661_v21 = vunpack.c.l.s4 %v4844_v62  ;;  %v3631_v25 = vunpack.c.0.s8 %v3630_v7 }
 0x18e   :  { %v3662_v6 = vunpack.c.0.s8 %v3661_v21  ;;  %v3634_v27 = vsub.s32 %v3631_v25, %v5465_v5 }
 0x190   :  { %v3665_v3 = vsub.s32 %v3662_v6, %v5465_v5 }
 0x192   :  { %4372 = vmatmul.mubr.f32.vlgmr.msra.gmra.mrb[4].mxu1 %v2316_v50 }
 0x193   :  { %4375 = vmatpush3.xpose.msra.mxu1 %v2251_v16  ;;  %4376 = vmatprep.mubr.msk.f32.mxu1 %vm4842_vm1, %v4841_v15 }
 0x194   :  { %4379 = vmatprep.subr.mxu1 %v4841_v15 }
 0x199   :  { %v4318_v39 = vpop.f32.mrb[2].mxu0 }
 0x19a   :  { %4377 = vmatmul.mubr.f32.vlgmr.msra.gmra.mrb[4].mxu1 %v2316_v50  ;;  %v1781_v57 = vpop.f32.mrb[3].mxu0  ;;  %v3183_v8 = vand.u32 4294901760, %v4318_v39 }
 0x19b   :  { %4381 = vmatprep.mubr.msk.f32.mxu1 %vm4842_vm1, %v4841_v15  ;;  %v2734_v19 = vand.u32 4294901760, %v1781_v57 }
 0x19c   :  { %v3260_v17 = vsub.f32 %v4318_v39, %v3183_v8 }
 0x19d   :  { %4380 = vmatpush3.msra.mxu1 %v2734_v19  ;;  %v2811_v23 = vsub.f32 %v1781_v57, %v2734_v19 }
 0x19e   :  { %4384 = vmatprep.subr.mxu1 %v4841_v15  ;;  %v3261_v28 = vand.u32 4294901760, %v3260_v17 }
 0x19f   :  { %v2812_v40 = vand.u32 4294901760, %v2811_v23 }
 0x1a0   :  { %v3262_v63 = vsub.f32 %v3260_v17, %v3261_v28 }
 0x1a1   :  { %v2813_v52 = vsub.f32 %v2811_v23, %v2812_v40 }
 0x1a2   :  { %v3263_v16 = vand.u32 4294901760, %v3262_v63 }
 0x1a3   :  { %v2814_v58 = vand.u32 4294901760, %v2813_v52 }
 0x241   :  { %v2240_v33 = vpop.f32.mrb[2].mxu1 }
 0x242   :  { %v2696_v42 = vmul.f32 0.125, %v2240_v33  ;;  %v4348_v37 = vpop.f32.mrb[3].mxu1 }
 0x244   :  { %v2705_v12 = vsel %vm2702_vm3, %v2696_v42, -1e+30 }
 0x245   :  { %v2708_v18 = vsel %vm2707_vm4, %v2705_v12, -inf }
 0x246   :  { %2709 = vmax.xlane.f32.xlu0 %v2708_v18 }
 0x26d   :  { %v2692_v30 = vpop.f32.mrb[4].mxu1 }
 0x26e   :  { %v2697_v10 = vmul.f32 0.125, %v2692_v30  ;;  %v4378_v34 = vpop.f32.mrb[5].mxu1 }
 0x270   :  { %v2706_v1 = vsel %vm2702_vm3, %v2697_v10, -1e+30 }
 0x271   :  { %v2711_v55 = vsel %vm2707_vm4, %v2706_v1, -inf }
 0x272   :  { %2712 = vmax.xlane.f32.xlu0 %v2711_v55 }
 0x2d3   :  { %v2710_v38 = vpop.xlane.xlu0 %2709 }
 0x2d4   :  { %v2714_v20 = vsub.f32 %v2705_v12, %v2710_v38 }
 0x2d6   :  { %v2716_v36 = vmul.f32 1.442695, %v2714_v20 }
 0x2d8   :  { %4809 = vpow2.f32 %v2716_v36 }
 0x2e2   :  { %v4810_v0 = vpop.eup %4809 }
 0x2e3   :  { %v2720_v2 = vsel %vm2707_vm4, %v4810_v0, 0.0 }
 0x2e4   :  { %2721 = vadd.xlane.f32.xlu1 %v2720_v2 }
 0x2ff   :  { %v2713_v43 = vpop.xlane.xlu0 %2712 }
 0x300   :  { %v2715_v45 = vsub.f32 %v2706_v1, %v2713_v43 }
 0x302   :  { %v2718_v46 = vmul.f32 1.442695, %v2715_v45 }
 0x304   :  { %4811 = vpow2.f32 %v2718_v46 }
 0x30e   :  { %v4812_v47 = vpop.eup %4811 }
 0x30f   :  { %v2723_v49 = vsel %vm2707_vm4, %v4812_v47, 0.0 }
 0x310   :  { %2724 = vadd.xlane.f32.xlu1 %v2723_v49 }
 0x371   :  { %v2722_v51 = vpop.xlane.xlu1 %2721 }
 0x372   :  { %4813 = vrcp.f32 %v2722_v51 }
 0x37c   :  { %v4814_v22 = vpop.eup %4813 }
 0x37d   :  { %v2727_v29 = vmul.f32 %v4814_v22, %v4810_v0 }
 0x37f   :  { %v2731_v35 = vsel %vm2707_vm4, %v2727_v29, 0 }
 0x380   :  { %v2799_v13 = vand.u32 4294901760, %v2731_v35 }
 0x382   :  { %v2800_v41 = vsub.f32 %v2731_v35, %v2799_v13 }
 0x384   :  { %v2801_v44 = vand.u32 4294901760, %v2800_v41 }
 0x386   :  { %v2802_v53 = vsub.f32 %v2800_v41, %v2801_v44 }
 0x388   :  { %v2803_v54 = vand.u32 4294901760, %v2802_v53 }
 0x38a   :  { %4382 = vmatmul.mubr.f32.vlgmr.msra.gmra.mrb[6].mxu1 %v2803_v54 }
 0x38b   :  { %4385 = vmatpush3.msra.mxu1 %v2814_v58  ;;  %4386 = vmatprep.mubr.msk.f32.mxu1 %vm4842_vm1, %v4841_v15 }
 0x38c   :  { %4389 = vmatprep.subr.mxu1 %v4841_v15 }
 0x392   :  { %4387 = vmatmul.mubr.f32.vlgmr.msra.gmra.mrb[6].mxu1 %v2799_v13 }
 0x393   :  { %4390 = vmatpush3.msra.mxu1 %v2811_v23  ;;  %4391 = vmatprep.mubr.msk.f32.mxu1 %vm4842_vm1, %v4841_v15 }
 0x394   :  { %4394 = vmatprep.subr.mxu1 %v4841_v15 }
 0x39a   :  { %4392 = vmatmul.mubr.f32.vlgmr.msra.gmra.mrb[6].mxu1 %v2800_v41 }
 0x39b   :  { %4395 = vmatpush3.msra.mxu1 %v2734_v19  ;;  %4396 = vmatprep.mubr.msk.f32.mxu1 %vm4842_vm1, %v4841_v15 }
 0x39c   :  { %4399 = vmatprep.subr.mxu1 %v4841_v15 }
 0x39d   :  { %v2725_v59 = vpop.xlane.xlu1 %2724 }
 0x39e   :  { %4815 = vrcp.f32 %v2725_v59 }
 0x3a2   :  { %4397 = vmatmul.mubr.f32.vlgmr.msra.gmra.mrb[6].mxu1 %v2801_v44 }
 0x3a3   :  { %4400 = vmatpush3.msra.mxu1 %v2812_v40  ;;  %4401 = vmatprep.mubr.msk.f32.mxu1 %vm4842_vm1, %v4841_v15 }
 0x3a4   :  { %4404 = vmatprep.subr.mxu1 %v4841_v15 }
 0x3a8   :  { %v4816_v11 = vpop.eup %4815 }
 0x3a9   :  { %v2729_v61 = vmul.f32 %v4816_v11, %v4812_v47 }
 0x3aa   :  { %4402 = vmatmul.mubr.f32.vlgmr.msra.gmra.mrb[6].mxu1 %v2799_v13 }
 0x3ab   :  { %4405 = vmatpush3.msra.mxu1 %v2734_v19  ;;  %4406 = vmatprep.mubr.msk.f32.mxu1 %vm4842_vm1, %v4841_v15  ;;  %v3180_v4 = vsel %vm2707_vm4, %v2729_v61, 0 }
 0x3ac   :  { %4409 = vmatprep.subr.mxu1 %v4841_v15  ;;  %v3248_v32 = vand.u32 4294901760, %v3180_v4 }
 0x3ae   :  { %v3249_v48 = vsub.f32 %v3180_v4, %v3248_v32 }
 0x3b0   :  { %v3250_v56 = vand.u32 4294901760, %v3249_v48 }
 0x3b2   :  { %4407 = vmatmul.mubr.f32.vlgmr.msra.gmra.mrb[6].mxu1 %v2799_v13  ;;  %v3251_v9 = vsub.f32 %v3249_v48, %v3250_v56 }
 0x3b3   :  { %4410 = vmatpush3.msra.mxu1 %v3183_v8  ;;  %4411 = vmatprep.mubr.msk.f32.mxu1 %vm4842_vm1, %v4841_v15 }
 0x3b4   :  { %4414 = vmatprep.subr.mxu1 %v4841_v15  ;;  %v3252_v50 = vand.u32 4294901760, %v3251_v9 }
 0x3b6   :  { %4412 = vmatmul.mubr.f32.vlgmr.msra.gmra.mrb[8].mxu1 %v3252_v50 }
 0x3b7   :  { %4415 = vmatpush3.msra.mxu1 %v3263_v16  ;;  %4416 = vmatprep.mubr.msk.f32.mxu1 %vm4842_vm1, %v4841_v15 }
 0x3b8   :  { %4419 = vmatprep.subr.mxu1 %v4841_v15 }
 0x3be   :  { %4417 = vmatmul.mubr.f32.vlgmr.msra.gmra.mrb[8].mxu1 %v3248_v32 }
 0x3bf   :  { %4420 = vmatpush3.msra.mxu1 %v3260_v17  ;;  %4421 = vmatprep.mubr.msk.f32.mxu1 %vm4842_vm1, %v4841_v15 }
 0x3c0   :  { %4424 = vmatprep.subr.mxu1 %v4841_v15 }
 0x3c6   :  { %4422 = vmatmul.mubr.f32.vlgmr.msra.gmra.mrb[8].mxu1 %v3249_v48 }
 0x3c7   :  { %4425 = vmatpush3.msra.mxu1 %v3183_v8  ;;  %4426 = vmatprep.mubr.msk.f32.mxu1 %vm4842_vm1, %v4841_v15 }
 0x3c8   :  { %4429 = vmatprep.subr.mxu1 %v4841_v15 }
 0x3ce   :  { %4427 = vmatmul.mubr.f32.vlgmr.msra.gmra.mrb[8].mxu1 %v3250_v56 }
 0x3cf   :  { %4430 = vmatpush3.msra.mxu1 %v3261_v28  ;;  %4431 = vmatprep.mubr.msk.f32.mxu1 %vm4842_vm1, %v4841_v15 }
 0x3d0   :  { %4434 = vmatprep.subr.mxu1 %v4841_v15 }
 0x3d6   :  { %4432 = vmatmul.mubr.f32.vlgmr.msra.gmra.mrb[8].mxu1 %v3248_v32 }
 0x3d7   :  { %4435 = vmatpush3.msra.mxu1 %v3183_v8  ;;  %4436 = vmatprep.mubr.msk.f32.mxu1 %vm4842_vm1, %v4841_v15 }
 0x3de   :  { %4437 = vmatmul.mubr.f32.vlgmr.msra.gmra.mrb[8].mxu1 %v3248_v32 }
 0x485   :  { %v3175_v60 = vpop.f32.mrb[6].mxu1 }
 0x486   :  { %v4408_v14 = vpop.f32.mrb[7].mxu1  ;;  %v3628_v26 = vcombine.high %v3175_v60, %v4841_v15  ;;  %v3635_v33 = vrot.slane %v3175_v60, %v3634_v27 }
 0x488   :  { %v3642_v18 = vrot.slane %v3628_v26, %v3634_v27 }
 0x4b1   :  { %v3624_v31 = vpop.f32.mrb[8].mxu1 }
 0x4b2   :  { %v3643_v42 = vcombine.high %v3624_v31, %v4841_v15  ;;  %v3650_v37 = vrot.slane %v3624_v31, %v3634_v27  ;;  %v4438_v12 = vpop.f32.mrb[9].mxu1 }
 0x4b4   :  { %v3657_v30 = vrot.slane %v3643_v42, %v3634_v27  ;;  %v3658_v10 = vcombine.low %v3635_v33, %v3650_v37  ;;  %v3659_v34 = vcombine.high %v3635_v33, %v3650_v37 }
 0x4b6   :  { %v3666_v1 = vrot.slane %v3658_v10, %v3665_v3  ;;  %v3674_v55 = vcombine.low %v3642_v18, %v3657_v30  ;;  %v3675_v39 = vcombine.high %v3642_v18, %v3657_v30  ;;  %v3673_v57 = vrot.slane %v3659_v34, %v3665_v3 }
 0x4b8   :  { %3699 = vrot.lane.b32.xlu1 %v3673_v57, %s4845_s3  ;;  %v3690_v19 = vcombine.high %v3666_v1, %v4841_v15  ;;  %v3682_v38 = vrot.slane %v3674_v55, %v3665_v3  ;;  %v3691_v5 = vcombine.high %v3673_v57, %v4841_v15  ;;  %v3689_v36 = vrot.slane %v3675_v39, %v3665_v3 }
 0x4ba   :  { %3695 = vrot.lane.b32.xlu0 %v3690_v19, %s4846_s12  ;;  %v3692_v20 = vcombine.high %v3682_v38, %v4841_v15  ;;  %v3693_v0 = vcombine.high %v3689_v36, %v4841_v15 }
 0x4bc   :  { %3703 = vrot.lane.b32.xlu1 %v3691_v5, %s4847_s13 }
 0x4be   :  { %3711 = vrot.lane.b32.xlu0 %v3692_v20, %s4848_s14 }
 0x4c0   :  { %3707 = vrot.lane.b32.xlu1 %v3682_v38, %s4849_s15 }
 0x4c2   :  { %3719 = vrot.lane.b32.xlu0 %v3693_v0, %s4850_s16 }
 0x4c4   :  { %3715 = vrot.lane.b32.xlu1 %v3689_v36, %s4851_s17 }
 0x52a   :  { %v3700_v2 = vpop.permute.xlu1 %3699 }
 0x52c   :  { %v3696_v43 = vpop.permute.xlu0 %3695 }
 0x52d   :  { %v3722_v45 = vsel %vm1791_vm2, %v3666_v1, %v3696_v43 }
 0x52e   :  { %v3704_v46 = vpop.permute.xlu1 %3703  ;;  %v3724_v47 = vsel %vm3723_vm5, %v3722_v45, %v3700_v2 }
 0x52f   :  { %v3726_v51 = vsel %vm3725_vm6, %v3724_v47, %v3704_v46 }
 0x530   :  { %v3712_v49 = vpop.permute.xlu0 %3711 }
 0x532   :  { %v3708_v22 = vpop.permute.xlu1 %3707 }
 0x533   :  { %v3727_v23 = vsel %vm28_vm0, %v3726_v51, %v3708_v22 }
 0x534   :  { %v3729_v29 = vsel %vm3728_vm7, %v3727_v23, %v3712_v49  ;;  %v3720_v35 = vpop.permute.xlu0 %3719 }
 0x536   :  { %v3716_v15 = vpop.permute.xlu1 %3715 }
 0x537   :  { %v3731_v13 = vsel %vm3730_vm8, %v3729_v29, %v3716_v15 }
 0x538   :  { %v3733_v40 = vsel %vm3732_vm9, %v3731_v13, %v3720_v35 }
 0x539   :  { %3734 = vst [vmem:[#allocation2] sm:$0x3] %v3733_v40 }
 0x53a   :  { %4828 = shalt.err (!%p4825_p4)
}
 0x53b   :  { %s4829_s2 = scalar_lea.hbm %s5533_s4, 32 }
 0x53c   :  { %p4830_p5 = scmp.ne.s32.totalorder %s5533_s4, %s4829_s2  ;;  %p4833_p6 = scmp.lt.u32.totalorder %s4829_s2, %s5533_s4 }
 0x53e   :  { %p4835_p7 = pnand %p4833_p6, %p4830_p5 }
 0x540   :  { %4838 = shalt.err (!%p4835_p7)
}
 0x541   :  { %3744 = dma.vmem_to_hbm [thread:$0]  %s3742_s1, 32, %s5533_s4, [#allocation3]  }
 0x542   :  { %4839 = dma.done.wait [#allocation3], 32  }
 0x543   :  { %4840 = vsyncadd [#allocation3], 4294967264 }
 0x544   :  { %3748 = vsyncpa [#allocation3], 1 }

</bundles_post_ra>
